<compile_context>
chip_gen: v7x
topology: tpu7x:2x2x1
jax: 0.10.0
libtpu: 0.0.40
codegen_flags: <defaults>
</compile_context>

<pallas_src>
import math

import jax
import jax.numpy as jnp
from jax import lax
from jax.experimental import pallas as pl
from jax.experimental.pallas import tpu as pltpu


def _router_kernel(x_ref, e_ref, out_ref):
    # x_ref:   (TILE_M, H)  input dtype
    # e_ref:   (E, H)       input dtype, VMEM-resident across grid steps
    # out_ref: (TILE_M, E)  output dtype (== input dtype)
    x = x_ref[...]
    e = e_ref[...]

    # (TILE_M, H) · (E, H)^T on the MXU, f32 accumulation -> (TILE_M, E)
    logits = lax.dot_general(
        x, e,
        dimension_numbers=(((1,), (1,)), ((), ())),
        preferred_element_type=jnp.float32,
    )

    # Numerically-stable softmax over the expert (last) axis, all in f32.
    m = jnp.max(logits, axis=-1, keepdims=True)
    p = jnp.exp(logits - m)
    denom = jnp.sum(p, axis=-1, keepdims=True)
    soft = p * pl.reciprocal(denom, approx=True)   # EUP vrcp, effectively free

    out_ref[...] = soft.astype(out_ref.dtype)


def _choose_tile_m(M, H, E, itemsize, budget_bytes=24 * 1024 * 1024):
    """Largest row tile (cap 1024, multiple of 8) whose double-buffered working
    set (x tile + resident expert table + out tile) fits the VMEM budget."""
    def fits(t):
        return (2 * t * H * itemsize          # double-buffered x tile
                + E * H * itemsize            # resident expert table
                + 2 * t * E * itemsize        # double-buffered output tile
                ) <= budget_bytes

    if M <= 1024 and fits(M):
        return M                              # full-dim block: always legal
    tile = 1024
    while tile > 8 and not fits(tile):
        tile //= 2
    return max(tile, 8)


def router_forward(x, expert_embeddings, *, tile_m=None):
    """x: (B, S, H); expert_embeddings: (E, H) -> softmax gates (B, S, E)."""
    B, S, H = x.shape
    E, H2 = expert_embeddings.shape
    assert H == H2, "hidden size mismatch"

    M = B * S
    x2 = x.reshape(M, H)                      # free reshape (contiguous)
    itemsize = x2.dtype.itemsize

    if tile_m is None:
        tile_m = _choose_tile_m(M, H, E, max(itemsize, 4))
    grid_m = pl.cdiv(M, tile_m)               # boundary blocks handled by Pallas

    out_dtype = x.dtype
    cost = pl.CostEstimate(
        flops=2 * M * H * E,
        transcendentals=M * E,
        bytes_accessed=(M * H * itemsize
                        + E * H * expert_embeddings.dtype.itemsize
                        + M * E * jnp.dtype(out_dtype).itemsize),
    )

    out = pl.pallas_call(
        _router_kernel,
        out_shape=jax.ShapeDtypeStruct((M, E), out_dtype),
        grid_spec=pltpu.PrefetchScalarGridSpec(
            num_scalar_prefetch=0,
            grid=(grid_m,),
            in_specs=[
                pl.BlockSpec((tile_m, H), lambda i: (i, 0)),
                # constant index_map -> expert table stays VMEM-resident
                pl.BlockSpec((E, H), lambda i: (0, 0)),
            ],
            out_specs=pl.BlockSpec((tile_m, E), lambda i: (i, 0)),
        ),
        compiler_params=pltpu.CompilerParams(
            dimension_semantics=("parallel",),
            vmem_limit_bytes=48 * 1024 * 1024,   # < physical on v5e/v6e/v7x
        ),
        cost_estimate=cost,
    )(x2, expert_embeddings)

    return out.reshape(B, S, E)


def init_expert_embeddings(key, num_experts, hidden_size):
    """kaiming_uniform_(nonlinearity='linear') equivalent:
    U(-bound, bound), bound = gain * sqrt(3 / fan_in), gain = 1, fan_in = H."""
    bound = math.sqrt(3.0 / hidden_size)
    return jax.random.uniform(
        key, (num_experts, hidden_size), dtype=jnp.float32,
        minval=-bound, maxval=bound,
    )


if __name__ == "__main__":
    # Small config: batch=2, seq=8, hidden=32, num_experts=8
    B, S, H, E = 2, 8, 32, 8

    key = jax.random.PRNGKey(0)
    kx, kw = jax.random.split(key)
    x = jax.random.normal(kx, (B, S, H), dtype=jnp.float32)
    expert_embeddings = init_expert_embeddings(kw, E, H)

    out = jax.block_until_ready(router_forward(x, expert_embeddings))
    assert out.shape == (B, S, E)

    # PyTorch-equivalent f32 reference (tolerance covers MXU default precision).
    ref = jax.nn.softmax(
        jnp.einsum("bsh,eh->bse", x, expert_embeddings), axis=-1
    )
    assert jnp.allclose(out, ref, atol=2e-2, rtol=2e-2)

    # Rows are (approximately) probability distributions.
    assert jnp.allclose(jnp.sum(out, axis=-1), 1.0, atol=3e-3)

    print("KERNEL_OK")
</pallas_src>

<mosaic_0001>
module attributes {stable_mosaic.version = 11 : i64} {
  func.func @_router_kernel(%arg0: i32, %arg1: memref<16x32xf32, #tpu.memory_space<vmem>>, %arg2: memref<8x32xf32, #tpu.memory_space<vmem>>, %arg3: memref<16x8xf32, #tpu.memory_space<vmem>>) attributes {dimension_semantics = [#tpu.dimension_semantics<parallel>], iteration_bounds = array<i64: 1>, scalar_prefetch = 0 : i64, scratch_operands = 0 : i64, tpu.core_type = #tpu.core_type<tc>, window_params = [{transform_indices = @transform_0, window_bounds = array<i64: 16, 32>}, {pipeline_mode = #tpu.pipeline_mode<synchronous>, transform_indices = @transform_1, window_bounds = array<i64: 8, 32>}, {transform_indices = @transform_2, window_bounds = array<i64: 16, 8>}]} {
    %c0 = arith.constant 0 : index
    %c0_0 = arith.constant 0 : index
    %0 = vector.load %arg1[%c0, %c0_0] : memref<16x32xf32, #tpu.memory_space<vmem>>, vector<16x32xf32>
    %c0_1 = arith.constant 0 : index
    %c0_2 = arith.constant 0 : index
    %1 = vector.load %arg2[%c0_1, %c0_2] : memref<8x32xf32, #tpu.memory_space<vmem>>, vector<8x32xf32>
    %cst = arith.constant dense<0.000000e+00> : vector<16x8xf32>
    %2 = tpu.matmul %0, %1, %cst {dimension_numbers = #tpu.dot_dimension_numbers<[1], [1], [0], [0], [0, 0, 1, 0], [], []>} : vector<16x32xf32>, vector<8x32xf32>, vector<16x8xf32> -> vector<16x8xf32>
    %cst_3 = arith.constant dense<0xFF800000> : vector<16xf32>
    %3 = vector.multi_reduction <maximumf>, %2, %cst_3 [1] : vector<16x8xf32> to vector<16xf32>
    %4 = vector.shape_cast %3 : vector<16xf32> to vector<16x1xf32>
    %5 = vector.broadcast %4 : vector<16x1xf32> to vector<16x8xf32>
    %6 = arith.subf %2, %5 : vector<16x8xf32>
    %7 = math.exp %6 : vector<16x8xf32>
    %cst_4 = arith.constant dense<0.000000e+00> : vector<16xf32>
    %8 = vector.multi_reduction <add>, %7, %cst_4 [1] : vector<16x8xf32> to vector<16xf32>
    %9 = vector.shape_cast %8 : vector<16xf32> to vector<16x1xf32>
    %10 = tpu.reciprocal %9 {approx = true} : vector<16x1xf32> -> vector<16x1xf32>
    %11 = vector.broadcast %10 : vector<16x1xf32> to vector<16x8xf32>
    %12 = arith.mulf %7, %11 : vector<16x8xf32>
    %c0_5 = arith.constant 0 : index
    %c0_6 = arith.constant 0 : index
    %13 = vector.load %arg3[%c0_5, %c0_6] : memref<16x8xf32, #tpu.memory_space<vmem>>, vector<16x8xf32>
    tpu.vector_store %arg3[%c0_5, %c0_6], %12 {strides = array<i32>} : memref<16x8xf32, #tpu.memory_space<vmem>>, vector<16x8xf32>,
    return
  }
  func.func @transform_0(%arg0: i32) -> (i32, i32) {
    %c0_i32 = arith.constant 0 : i32
    %c0_i32_0 = arith.constant 0 : i32
    return %arg0, %c0_i32 : i32, i32
  }
  func.func @transform_1(%arg0: i32) -> (i32, i32) {
    %c0_i32 = arith.constant 0 : i32
    %c0_i32_0 = arith.constant 0 : i32
    %c0_i32_1 = arith.constant 0 : i32
    return %c0_i32, %c0_i32_0 : i32, i32
  }
  func.func @transform_2(%arg0: i32) -> (i32, i32) {
    %c0_i32 = arith.constant 0 : i32
    %c0_i32_0 = arith.constant 0 : i32
    return %arg0, %c0_i32 : i32, i32
  }
}

</mosaic_0001>

<bundles_post_ra>
// kernel: tpu_custom_call.1
= control target key start
LH: loop header
LB: loop body
LE: loop exit
PB: predicated region body
PF: predicated region fallthrough
CT: control target
= control target key end

     0   :  { %7 = vsyncpa [#allocation3], 0  ;;  %s282_s0 = inlined_call_operand.hbm [shape: f32[16,32], index: 0, kind: input, shape index: {}]   ;;  %s283_s1 = inlined_call_operand.hbm [shape: f32[8,32], index: 1, kind: input, shape index: {}]   ;;  %s284_s2 = inlined_call_operand.vmem [shape: f32[16,8], index: 2, kind: output, shape index: {}]  }
   0x1   :  { %8 = vsyncpa [#allocation5], 0  ;;  %s227_s9 = smov [#allocation2]   ;;  %s179_s13 = scalar_lea.hbm %s282_s0, 256 }
   0x2   :  { %s14_s10 = sshll.u32 %s227_s9, 4  ;;  %p180_p0 = scmp.ne.s32.totalorder %s282_s0, %s179_s13  ;;  %s15_s10 = int_to_ptr.vmem [resolvable:$true] %s14_s10 }
   0x3   :  { %p183_p1 = scmp.lt.u32.totalorder %s179_s13, %s282_s0 }
   0x5   :  { %p185_p2 = pnand %p183_p1, %p180_p0 }
   0x7   :  { %188 = shalt.err (!%p185_p2)
}
   0x8   :  { %s189_s18 = scalar_lea.vmem %s15_s10, 256  ;;  %p194_p4 = scmp.lt.s32.totalorder %s15_s10, %s15_s10 }
   0x9   :  { %p190_p3 = scmp.ne.s32.totalorder %s15_s10, %s189_s18  ;;  %p195_p5 = scmp.lt.s32.totalorder %s189_s18, %s189_s18 }
   0xb   :  { %p196_p6 = por %p195_p5, %p194_p4 }
   0xd   :  { %p197_p7 = pnand %p196_p6, %p190_p3 }
   0xf   :  { %200 = shalt.err (!%p197_p7)
}
  0x10   :  { %s228_s19 = smov 128   ;;  %s229_s20 = smov 8  }
  0x11   :  { %20 = dma.hbm_to_vmem [thread:$0]  %s282_s0, 256, %s15_s10, [#allocation3], %s228_s19, %s228_s19, %s229_s20  }
  0x12   :  { %s230_s23 = smov [#allocation4]   ;;  %s201_s27 = scalar_lea.hbm %s283_s1, 128 }
  0x13   :  { %s27_s24 = sshll.u32 %s230_s23, 4  ;;  %p202_p8 = scmp.ne.s32.totalorder %s283_s1, %s201_s27  ;;  %s28_s24 = int_to_ptr.vmem [resolvable:$true] %s27_s24 }
  0x14   :  { %p205_p9 = scmp.lt.u32.totalorder %s201_s27, %s283_s1 }
  0x16   :  { %p207_p10 = pnand %p205_p9, %p202_p8 }
  0x18   :  { %210 = shalt.err (!%p207_p10)
}
  0x19   :  { %s211_s4 = scalar_lea.vmem %s28_s24, 128  ;;  %p216_p12 = scmp.lt.s32.totalorder %s28_s24, %s28_s24 }
  0x1a   :  { %p212_p11 = scmp.ne.s32.totalorder %s28_s24, %s211_s4  ;;  %p217_p13 = scmp.lt.s32.totalorder %s211_s4, %s211_s4 }
  0x1c   :  { %p218_p0 = por %p217_p13, %p216_p12 }
  0x1e   :  { %p219_p1 = pnand %p218_p0, %p212_p11 }
  0x20   :  { %222 = shalt.err (!%p219_p1)
}
  0x21   :  { %30 = dma.hbm_to_vmem [thread:$0]  %s283_s1, 128, %s28_s24, [#allocation5]  }
  0x22   :  { %223 = dma.done.wait [#allocation3], 256  }
  0x23   :  { %224 = vsyncadd [#allocation3], 4294967040 }
  0x24   :  { %225 = dma.done.wait [#allocation5], 128  }
  0x25   :  { %226 = vsyncadd [#allocation5], 4294967168  ;;  %vm40_vm0 = vcmask 261120   ;;  %v39_v0 = vld [vmem:[#allocation4] sm:$0xff]  ;;  %v37_v1 = vld [vmem:[#allocation2] sm:$0xff]  ;;  %vm125_vm1 = vcmask 64512  }
  0x26   :  { %162 = vmatprep.subr.msk.mxu0 %vm40_vm0, %v39_v0  ;;  %164 = vmatprep.mubr.msk.f32.mxu0 %vm40_vm0, %v37_v1  ;;  %v38_v2 = vld [vmem:[#allocation2 + $0x8] sm:$0xff] }
  0x27   :  { %163 = vmatpush3.xpose.msk.msra.mxu0 %vm40_vm0, %v39_v0 }
  0x2a   :  { %165 = vmatmul.mubr.msk.f32.vlgmr.msra.gmra.mrb[0].mxu0 %vm40_vm0, %v38_v2 }
  0xfd   :  { %v166_v3 = vpop.f32.mrb[0].mxu0 }
  0xfe   :  { %v116_v4 = vpop.f32.mrb[1].mxu0  ;;  %v129_v6 = vsel %vm125_vm1, %v166_v3, -inf }
  0xff   :  { %v126_v5 = vsel %vm125_vm1, %v116_v4, -inf }
 0x100   :  { %127 = vmax.xlane.f32.xlu0 %v126_v5 }
 0x104   :  { %130 = vmax.xlane.f32.xlu0 %v129_v6 }
 0x18d   :  { %v128_v7 = vpop.xlane.xlu0 %127 }
 0x18e   :  { %v132_v8 = vsub.f32 %v116_v4, %v128_v7 }
 0x190   :  { %v134_v9 = vmul.f32 1.442695, %v132_v8 }
 0x191   :  { %v131_v10 = vpop.xlane.xlu0 %130 }
 0x192   :  { %171 = vpow2.f32 %v134_v9  ;;  %v133_v11 = vsub.f32 %v166_v3, %v131_v10 }
 0x194   :  { %v136_v12 = vmul.f32 1.442695, %v133_v11 }
 0x196   :  { %173 = vpow2.f32 %v136_v12 }
 0x19c   :  { %v172_v13 = vpop.eup %171 }
 0x19d   :  { %v138_v14 = vsel %vm125_vm1, %v172_v13, 0.0 }
 0x19e   :  { %139 = vadd.xlane.f32.xlu1 %v138_v14 }
 0x1a0   :  { %v174_v15 = vpop.eup %173 }
 0x1a1   :  { %v141_v16 = vsel %vm125_vm1, %v174_v15, 0.0 }
 0x1a2   :  { %142 = vadd.xlane.f32.xlu1 %v141_v16 }
 0x22b   :  { %v140_v17 = vpop.xlane.xlu1 %139 }
 0x22c   :  { %175 = vrcp.f32 %v140_v17 }
 0x22f   :  { %v143_v18 = vpop.xlane.xlu1 %142 }
 0x230   :  { %177 = vrcp.f32 %v143_v18 }
 0x236   :  { %v176_v19 = vpop.eup %175 }
 0x237   :  { %v146_v20 = vmul.f32 %v176_v19, %v172_v13 }
 0x239   :  { %148 = vst.msk [vmem:[%s284_s2] sm:$0xff] %vm125_vm1, %v146_v20 }
 0x23a   :  { %v178_v21 = vpop.eup %177 }
 0x23b   :  { %v147_v22 = vmul.f32 %v178_v21, %v174_v15 }
 0x23d   :  { %149 = vst.msk [vmem:[%s284_s2 + $0x8] sm:$0xff] %vm125_vm1, %v147_v22 }
 0x23e   :  { %154 = vsyncpa [#allocation3], 1 }
 0x23f   :  { %155 = vsyncpa [#allocation5], 1 }

</bundles_post_ra>
